<compile_context>
chip_gen: v5e
topology: v5e:2x2
jax: 0.10.0
libtpu: 0.0.40
codegen_flags: <defaults>
</compile_context>

<pallas_src>
import jax
import jax.numpy as jnp
from jax import lax
from jax.experimental import pallas as pl
from jax.experimental.pallas import tpu as pltpu

BN_EPS = 1e-5  # torch.nn.BatchNorm1d default


def _round_up(x, m):
    return ((x + m - 1) // m) * m


def linear_relu_bn_kernel(x_ref, w_ref, p_ref, o_ref):
    # x_ref: (N, dim1) bf16 (resident across all feature tiles)
    # w_ref: (dim1, TILE_N) bf16  -- already transposed, no in-kernel vxpose
    # p_ref: (3, TILE_N) f32      -- rows: bias, gamma, beta
    h = lax.dot_general(
        x_ref[...], w_ref[...],
        dimension_numbers=(((1,), (0,)), ((), ())),
        preferred_element_type=jnp.float32,
    )
    params = p_ref[...]
    bias = params[0:1, :]
    gamma = params[1:2, :]
    beta = params[2:3, :]

    h = jnp.maximum(h + bias, 0.0)  # Linear bias + ReLU

    # BatchNorm1d (training mode): exact full-batch stats, one pass over h.
    mean = jnp.mean(h, axis=0, keepdims=True)
    msq = jnp.mean(h * h, axis=0, keepdims=True)
    var = jnp.maximum(msq - mean * mean, 0.0)      # clamp: cancellation safety
    s = gamma * lax.rsqrt(var + BN_EPS)            # (1, TILE_N), rsqrt -> EUP
    t = beta - mean * s
    o_ref[...] = (h * s + t).astype(o_ref.dtype)   # 2 VALU ops / element


def linear_layer_forward(x, w, b, gamma, beta, *,
                         mxu_dtype=jnp.bfloat16, out_dtype=jnp.float32):
    """x: (N, dim1); w: (dim2, dim1) [PyTorch layout]; b, gamma, beta: (dim2,)."""
    n, dim1 = x.shape
    dim2 = w.shape[0]

    # Lane-dense feature axis: pad dim2 to a multiple of 128.
    dim2_p = _round_up(dim2, 128)
    pad_f = dim2_p - dim2

    in_dsize = jnp.dtype(mxu_dtype).itemsize
    out_dsize = jnp.dtype(out_dtype).itemsize

    # Per-generation VMEM capacity (v5e/v6e: 128 MiB, v7x: 64 MiB per core).
    try:
        vmem_cap = int(pltpu.get_tpu_info().vmem_capacity_bytes)
    except Exception:
        vmem_cap = 64 << 20  # safe default (v7x per-core size)
    budget = int(vmem_cap * 0.85)

    def footprint(t):
        return (n * dim1 * in_dsize           # x block (constant index -> resident)
                + 2 * dim1 * t * in_dsize     # weight tile, double-buffered
                + 2 * n * t * out_dsize       # output tile, double-buffered
                + 2 * 8 * t * 4               # packed params (padded to 8 sublanes)
                + (1 << 20))                  # margin

    # Feature-tile size: largest candidate that divides dim2_p, fits the VMEM
    # budget, and leaves >=2 tiles whenever possible (v7x megacore).  384 is
    # skipped (partial pass on 256-wide MXUs); harmless on v5e.
    max_tile = dim2_p if dim2_p < 256 else dim2_p // 2
    tile_n = 128
    for t in (1024, 512, 256, 128):
        if t <= max_tile and dim2_p % t == 0 and footprint(t) <= budget:
            tile_n = t
            break
    num_tiles = dim2_p // tile_n

    # Explicit scoped-VMEM limit: accurate footprint with headroom, capped at
    # the physical capacity of this generation (no blanket 64 MiB clamp).
    vmem_limit = int(min(max(2 * footprint(tile_n), 16 << 20), vmem_cap))

    # MXU feeds in bf16 (f32 accumulate); epilogue params stay f32.
    x_c = jnp.asarray(x, mxu_dtype)                                       # (N, dim1)
    w_t = jnp.pad(jnp.asarray(w, mxu_dtype).T, ((0, 0), (0, pad_f)))      # (dim1, dim2_p)
    params = jnp.stack([                                                  # (3, dim2_p)
        jnp.pad(jnp.asarray(b, jnp.float32), (0, pad_f)),
        jnp.pad(jnp.asarray(gamma, jnp.float32), (0, pad_f)),
        jnp.pad(jnp.asarray(beta, jnp.float32), (0, pad_f)),
    ], axis=0)

    cost = pl.CostEstimate(
        flops=2 * n * dim1 * dim2_p,
        transcendentals=dim2_p,  # one rsqrt per feature
        bytes_accessed=(x_c.size * in_dsize + w_t.size * in_dsize
                        + params.size * 4 + n * dim2_p * out_dsize),
    )

    out_p = pl.pallas_call(
        linear_relu_bn_kernel,
        out_shape=jax.ShapeDtypeStruct((n, dim2_p), out_dtype),
        grid=(num_tiles,),
        in_specs=[
            pl.BlockSpec((n, dim1), lambda j: (0, 0)),        # x (full, resident)
            pl.BlockSpec((dim1, tile_n), lambda j: (0, j)),   # weight tile (dim1, TILE_N)
            pl.BlockSpec((3, tile_n), lambda j: (0, j)),      # packed bias/gamma/beta
        ],
        out_specs=pl.BlockSpec((n, tile_n), lambda j: (0, j)),
        compiler_params=pltpu.CompilerParams(
            dimension_semantics=("parallel",),
            vmem_limit_bytes=vmem_limit,
        ),
        cost_estimate=cost,
    )(x_c, w_t, params)

    return out_p[:, :dim2]


if __name__ == "__main__":
    # Small shapes consistent with the module: batch=8, dim1=32, dim2=64
    batch, dim1, dim2 = 8, 32, 64

    key = jax.random.PRNGKey(0)
    kx, kw, kb = jax.random.split(key, 3)

    # Input
    x = jax.random.normal(kx, (batch, dim1), dtype=jnp.float32)

    # Deterministic parameter init mirroring the module's __init__:
    #  - fc1.weight: xavier_normal_ -> N(0, 2/(dim1+dim2)), shape (dim2, dim1)
    #  - fc1.bias:   uniform(-1/sqrt(dim1), 1/sqrt(dim1)) (PyTorch default)
    #  - bn.weight (gamma) = 1, bn.bias (beta) = 0
    xavier_std = (2.0 / (dim1 + dim2)) ** 0.5
    w = xavier_std * jax.random.normal(kw, (dim2, dim1), dtype=jnp.float32)
    bound = 1.0 / (dim1 ** 0.5)
    b = jax.random.uniform(kb, (dim2,), dtype=jnp.float32, minval=-bound, maxval=bound)
    gamma = jnp.ones((dim2,), jnp.float32)
    beta = jnp.zeros((dim2,), jnp.float32)

    out = linear_layer_forward(x, w, b, gamma, beta)
    jax.block_until_ready(out)
    assert out.shape == (batch, dim2)

    # Tight check vs a pure-JAX reference using the same bf16-fed matmul
    # (f32 accumulate), so the comparison isolates the BN epilogue math.
    h_ref = lax.dot_general(
        x.astype(jnp.bfloat16), w.astype(jnp.bfloat16).T,
        dimension_numbers=(((1,), (0,)), ((), ())),
        preferred_element_type=jnp.float32,
    ) + b
    h_ref = jnp.maximum(h_ref, 0.0)
    mean = h_ref.mean(axis=0, keepdims=True)
    var = ((h_ref - mean) ** 2).mean(axis=0, keepdims=True)
    ref = (h_ref - mean) / jnp.sqrt(var + BN_EPS) * gamma + beta
    assert jnp.allclose(out, ref, atol=1e-3, rtol=1e-3), (
        float(jnp.max(jnp.abs(out - ref))))

    # Looser check against a full-f32 reference (bf16 MXU feeds introduce
    # small, bounded error).
    h32 = jnp.maximum(x @ w.T + b, 0.0)
    m32 = h32.mean(axis=0, keepdims=True)
    v32 = ((h32 - m32) ** 2).mean(axis=0, keepdims=True)
    ref32 = (h32 - m32) / jnp.sqrt(v32 + BN_EPS) * gamma + beta
    assert jnp.allclose(out, ref32, atol=5e-2, rtol=5e-2)

    print("KERNEL_OK")
</pallas_src>

<mosaic_0001>
module attributes {stable_mosaic.version = 11 : i64} {
  func.func @linear_relu_bn_kernel(%arg0: i32, %arg1: memref<8x32xbf16, #tpu.memory_space<vmem>>, %arg2: memref<32x128xbf16, #tpu.memory_space<vmem>>, %arg3: memref<3x128xf32, #tpu.memory_space<vmem>>, %arg4: memref<8x128xf32, #tpu.memory_space<vmem>>) attributes {dimension_semantics = [#tpu.dimension_semantics<parallel>], iteration_bounds = array<i64: 1>, scalar_prefetch = 0 : i64, scratch_operands = 0 : i64, tpu.core_type = #tpu.core_type<tc>, window_params = [{pipeline_mode = #tpu.pipeline_mode<synchronous>, transform_indices = @transform_0, window_bounds = array<i64: 8, 32>}, {transform_indices = @transform_1, window_bounds = array<i64: 32, 128>}, {transform_indices = @transform_2, window_bounds = array<i64: 3, 128>}, {transform_indices = @transform_3, window_bounds = array<i64: 8, 128>}]} {
    %c0 = arith.constant 0 : index
    %c0_0 = arith.constant 0 : index
    %0 = vector.load %arg1[%c0, %c0_0] : memref<8x32xbf16, #tpu.memory_space<vmem>>, vector<8x32xbf16>
    %c0_1 = arith.constant 0 : index
    %c0_2 = arith.constant 0 : index
    %1 = vector.load %arg2[%c0_1, %c0_2] : memref<32x128xbf16, #tpu.memory_space<vmem>>, vector<32x128xbf16>
    %cst = arith.constant dense<0.000000e+00> : vector<8x128xf32>
    %2 = tpu.matmul %0, %1, %cst {dimension_numbers = #tpu.dot_dimension_numbers<[1], [0], [0], [1], [0, 0, 1, 1], [], []>} : vector<8x32xbf16>, vector<32x128xbf16>, vector<8x128xf32> -> vector<8x128xf32>
    %c0_3 = arith.constant 0 : index
    %c0_4 = arith.constant 0 : index
    %3 = vector.load %arg3[%c0_3, %c0_4] : memref<3x128xf32, #tpu.memory_space<vmem>>, vector<3x128xf32>
    %4 = vector.extract_strided_slice %3 {offsets = [0, 0], sizes = [1, 128], strides = [1, 1]} : vector<3x128xf32> to vector<1x128xf32>
    %5 = vector.extract_strided_slice %3 {offsets = [1, 0], sizes = [1, 128], strides = [1, 1]} : vector<3x128xf32> to vector<1x128xf32>
    %6 = vector.extract_strided_slice %3 {offsets = [2, 0], sizes = [1, 128], strides = [1, 1]} : vector<3x128xf32> to vector<1x128xf32>
    %7 = vector.broadcast %4 : vector<1x128xf32> to vector<8x128xf32>
    %8 = arith.addf %2, %7 : vector<8x128xf32>
    %cst_5 = arith.constant 0.000000e+00 : f32
    %9 = vector.broadcast %cst_5 : f32 to vector<8x128xf32>
    %10 = arith.maximumf %8, %9 : vector<8x128xf32>
    %cst_6 = arith.constant dense<0.000000e+00> : vector<128xf32>
    %11 = vector.multi_reduction <add>, %10, %cst_6 [0] : vector<8x128xf32> to vector<128xf32>
    %12 = vector.shape_cast %11 : vector<128xf32> to vector<1x128xf32>
    %cst_7 = arith.constant 8.000000e+00 : f32
    %13 = vector.broadcast %cst_7 : f32 to vector<1x128xf32>
    %14 = arith.divf %12, %13 : vector<1x128xf32>
    %15 = arith.mulf %10, %10 : vector<8x128xf32>
    %cst_8 = arith.constant dense<0.000000e+00> : vector<128xf32>
    %16 = vector.multi_reduction <add>, %15, %cst_8 [0] : vector<8x128xf32> to vector<128xf32>
    %17 = vector.shape_cast %16 : vector<128xf32> to vector<1x128xf32>
    %cst_9 = arith.constant 8.000000e+00 : f32
    %18 = vector.broadcast %cst_9 : f32 to vector<1x128xf32>
    %19 = arith.divf %17, %18 : vector<1x128xf32>
    %20 = arith.mulf %14, %14 : vector<1x128xf32>
    %21 = arith.subf %19, %20 : vector<1x128xf32>
    %cst_10 = arith.constant 0.000000e+00 : f32
    %22 = vector.broadcast %cst_10 : f32 to vector<1x128xf32>
    %23 = arith.maximumf %21, %22 : vector<1x128xf32>
    %cst_11 = arith.constant 9.99999974E-6 : f32
    %24 = vector.broadcast %cst_11 : f32 to vector<1x128xf32>
    %25 = arith.addf %23, %24 : vector<1x128xf32>
    %26 = math.rsqrt %25 : vector<1x128xf32>
    %27 = arith.mulf %5, %26 : vector<1x128xf32>
    %28 = arith.mulf %14, %27 : vector<1x128xf32>
    %29 = arith.subf %6, %28 : vector<1x128xf32>
    %30 = vector.broadcast %27 : vector<1x128xf32> to vector<8x128xf32>
    %31 = arith.mulf %10, %30 : vector<8x128xf32>
    %32 = vector.broadcast %29 : vector<1x128xf32> to vector<8x128xf32>
    %33 = arith.addf %31, %32 : vector<8x128xf32>
    %c0_12 = arith.constant 0 : index
    %c0_13 = arith.constant 0 : index
    %34 = vector.load %arg4[%c0_12, %c0_13] : memref<8x128xf32, #tpu.memory_space<vmem>>, vector<8x128xf32>
    tpu.vector_store %arg4[%c0_12, %c0_13], %33 {strides = array<i32>} : memref<8x128xf32, #tpu.memory_space<vmem>>, vector<8x128xf32>,
    return
  }
  func.func @transform_0(%arg0: i32) -> (i32, i32) {
    %c0_i32 = arith.constant 0 : i32
    %c0_i32_0 = arith.constant 0 : i32
    %c0_i32_1 = arith.constant 0 : i32
    return %c0_i32, %c0_i32_0 : i32, i32
  }
  func.func @transform_1(%arg0: i32) -> (i32, i32) {
    %c0_i32 = arith.constant 0 : i32
    %c0_i32_0 = arith.constant 0 : i32
    return %c0_i32, %arg0 : i32, i32
  }
  func.func @transform_2(%arg0: i32) -> (i32, i32) {
    %c0_i32 = arith.constant 0 : i32
    %c0_i32_0 = arith.constant 0 : i32
    return %c0_i32, %arg0 : i32, i32
  }
  func.func @transform_3(%arg0: i32) -> (i32, i32) {
    %c0_i32 = arith.constant 0 : i32
    %c0_i32_0 = arith.constant 0 : i32
    return %c0_i32, %arg0 : i32, i32
  }
}

</mosaic_0001>

<bundles_post_ra>
// kernel: tpu_custom_call.1
= control target key start
LH: loop header
LB: loop body
LE: loop exit
PB: predicated region body
PF: predicated region fallthrough
CT: control target
= control target key end

     0   :  { %8 = vsyncpa [#allocation3], 0  ;;  %s324_s0 = inlined_call_operand.hbm [shape: bf16[8,32], index: 0, kind: input, shape index: {}]   ;;  %s325_s1 = inlined_call_operand.hbm [shape: bf16[32,128], index: 1, kind: input, shape index: {}]   ;;  %s326_s2 = inlined_call_operand.hbm [shape: f32[3,128], index: 2, kind: input, shape index: {}]   ;;  %s327_s3 = inlined_call_operand.hbm [shape: f32[8,128], index: 3, kind: output, shape index: {}]  }
   0x1   :  { %9 = vsyncpa [#allocation6], 0  ;;  %s26_s14 = sshll.u32 %s325_s1, 4  ;;  %s27_s14 = int_to_ptr.hbm [resolvable:$true] %s26_s14 }
   0x2   :  { %10 = vsyncpa [#allocation4], 0  ;;  %s285_s15 = smov [#allocation5]   ;;  %s16_s19 = sshll.u32 %s324_s0, 4  ;;  %s17_s19 = int_to_ptr.hbm [resolvable:$true] %s16_s19 }
   0x3   :  { %s28_s16 = sshll.u32 %s285_s15, 4  ;;  %s286_s20 = smov 64   ;;  %s29_s16 = int_to_ptr.vmem [resolvable:$true] %s28_s16 }
   0x4   :  { %s287_s21 = smov 4   ;;  %s288_s22 = smov [#allocation2]  }
   0x5   :  { %34 = dma.hbm_to_vmem [thread:$0]  %s27_s14, 256, %s29_s16, [#allocation6], %s286_s20, %s286_s20, %s287_s21  }
   0x6   :  { %s18_s23 = sshll.u32 %s288_s22, 4  ;;  %s40_s26 = sshll.u32 %s326_s2, 4  ;;  %s19_s23 = int_to_ptr.vmem [resolvable:$true] %s18_s23  ;;  %s41_s26 = int_to_ptr.hbm [resolvable:$true] %s40_s26 }
   0x7   :  { %21 = dma.hbm_to_vmem [thread:$0]  %s17_s19, 64, %s19_s23, [#allocation3]  }
   0x8   :  { %s289_s1 = smov [#allocation7]  }
   0x9   :  { %s42_s27 = sshll.u32 %s289_s1, 4  ;;  %s43_s27 = int_to_ptr.vmem [resolvable:$true] %s42_s27 }
   0xa   :  { %45 = dma.hbm_to_vmem [thread:$0]  %s41_s26, 64, %s43_s27, [#allocation6]  }
   0xb   :  { %279 = dma.done.wait [#allocation3], 64  }
   0xc   :  { %280 = vsyncadd [#allocation3], 4294967232 }
   0xd   :  { %281 = dma.done.wait [#allocation6], 320  }
   0xe   :  { %282 = vsyncadd [#allocation6], 4294966976  ;;  %v171_v0 = vld [vmem:[#allocation5 + $0x8] sm:$0xff]  ;;  %v170_v1 = vld [vmem:[#allocation5] sm:$0xff]  ;;  %vm78_vm0 = vcmask 261120   ;;  %v290_v3 = vmov 8.0  }
   0xf   :  { %88 = vmatpush.bf16.msra.mxu0 %v171_v0  ;;  %v59_v2 = vld [vmem:[#allocation2] sm:$0xf]  ;;  %179 = vrcp.f32 %v290_v3  ;;  %v64_v4 = vld [vmem:[#allocation7] sm:$0x7]  ;;  %s291_s0 = smov [#allocation8]   ;;  %s150_s30 = sshll.u32 %s327_s3, 4  ;;  %s151_s30 = int_to_ptr.hbm [resolvable:$true] %s150_s30 }
  0x10   :  { %v65_v6 = vperm.slane %v64_v4, 0  ;;  %s148_s2 = sshll.u32 %s291_s0, 4  ;;  %s149_s2 = int_to_ptr.vmem [resolvable:$true] %s148_s2 }
  0x13   :  { %89 = vmatpush.bf16.msra.mxu0 %v170_v1 }
  0x15   :  { %v180_v5 = vpop.eup %179 }
  0x16   :  { %169 = vmatmul.msk.bf16.vlgmr.msra.gmra.mxu0 %vm78_vm0, %v59_v2  ;;  %v103_v7 = vmul.f32 8.0, %v180_v5  ;;  %vm107_vm1 = vweird.f32 %v180_v5 }
  0x18   :  { %v104_v10 = vsub.f32 1.0, %v103_v7 }
  0x1a   :  { %v105_v14 = vmul.f32 %v180_v5, %v104_v10 }
  0x1c   :  { %v106_v20 = vadd.f32 %v180_v5, %v105_v14 }
  0x1e   :  { %v108_v25 = vsel %vm107_vm1, %v180_v5, %v106_v20 }
  0x93   :  { %v91_v8 = vpop.f32.mrf.mxu0 }
  0x94   :  { %v92_v9 = vadd.f32 %v91_v8, %v65_v6 }
  0x96   :  { %v95_v11 = vmax.f32 %v92_v9, 0.0 }
  0x98   :  { %v96_v12 = vrot.slane %v95_v11, 4  ;;  %v110_v13 = vmul.f32 %v95_v11, %v95_v11 }
  0x9a   :  { %v97_v15 = vadd.f32 %v96_v12, %v95_v11  ;;  %v111_v16 = vrot.slane %v110_v13, 4 }
  0x9b   :  { %v93_v17 = vpop.f32.mrf.mxu0 }
  0x9c   :  { %v98_v18 = vrot.slane %v97_v15, 2  ;;  %v112_v19 = vadd.f32 %v111_v16, %v110_v13 }
  0x9e   :  { %v99_v21 = vadd.f32 %v98_v18, %v97_v15  ;;  %v113_v22 = vrot.slane %v112_v19, 2 }
  0xa0   :  { %v100_v23 = vrot.slane %v99_v21, 1  ;;  %v114_v24 = vadd.f32 %v113_v22, %v112_v19 }
  0xa2   :  { %v101_v26 = vadd.f32 %v100_v23, %v99_v21  ;;  %v115_v27 = vrot.slane %v114_v24, 1 }
  0xa4   :  { %v109_v28 = vmul.f32 %v108_v25, %v101_v26  ;;  %v116_v29 = vadd.f32 %v115_v27, %v114_v24 }
  0xa6   :  { %v117_v30 = vmul.f32 %v116_v29, %v108_v25  ;;  %v118_v31 = vmul.f32 %v109_v28, %v109_v28 }
  0xa8   :  { %v119_v32 = vsub.f32 %v117_v30, %v118_v31 }
  0xaa   :  { %v120_v33 = vmax.f32 %v119_v32, 0.0 }
  0xac   :  { %v121_v34 = vadd.f32 1e-05, %v120_v33 }
  0xae   :  { %181 = vrsqrt.f32 %v121_v34  ;;  %vm128_vm3 = vweird.f32 %v121_v34 }
  0xb4   :  { %v182_v35 = vpop.eup %181 }
  0xb5   :  { %v123_v36 = vmul.f32 %v182_v35, %v121_v34  ;;  %vm129_vm2 = vweird.f32 %v182_v35 }
  0xb6   :  { %vm130_vm4 = vmor %vm128_vm3, %vm129_vm2 }
  0xb7   :  { %v124_v37 = vmul.f32 %v182_v35, %v123_v36 }
  0xb9   :  { %v125_v38 = vmul.f32 0.5, %v124_v37 }
  0xbb   :  { %v126_v39 = vsub.f32 1.5, %v125_v38 }
  0xbd   :  { %v127_v40 = vmul.f32 %v182_v35, %v126_v39 }
  0xbf   :  { %v131_v41 = vsel %vm130_vm4, %v182_v35, %v127_v40 }
  0xc0   :  { %v132_v42 = vmul.f32 %v131_v41, %v64_v4 }
  0xc2   :  { %v133_v43 = vmul.f32 %v132_v42, %v109_v28  ;;  %v138_v45 = vperm.slane %v132_v42, 1 }
  0xc4   :  { %v135_v44 = vrot.slane %v133_v43, 7  ;;  %v139_v47 = vmul.f32 %v138_v45, %v95_v11 }
  0xc6   :  { %v137_v46 = vsub.f32 %v64_v4, %v135_v44 }
  0xc8   :  { %v140_v48 = vperm.slane %v137_v46, 2 }
  0xca   :  { %v141_v49 = vadd.f32 %v140_v48, %v139_v47 }
  0xcc   :  { %142 = vst [vmem:[#allocation8] sm:$0xff] %v141_v49 }
  0xcd   :  { %153 = dma.vmem_to_hbm [thread:$0]  %s149_s2, 128, %s151_s30, [#allocation4]  }
  0xce   :  { %283 = dma.done.wait [#allocation4], 128  }
  0xcf   :  { %284 = vsyncadd [#allocation4], 4294967168 }
  0xd0   :  { %158 = vsyncpa [#allocation3], 1 }
  0xd1   :  { %159 = vsyncpa [#allocation6], 1 }
  0xd2   :  { %160 = vsyncpa [#allocation4], 1 }

</bundles_post_ra>
